<compile_context>
chip_gen: v7x
topology: tpu7x:2x2x1
jax: 0.10.0
libtpu: 0.0.40
codegen_flags: <defaults>
</compile_context>

<pallas_src>
import jax
import jax.numpy as jnp
from jax.experimental import pallas as pl
from jax.experimental.pallas import tpu as pltpu


_X_TILE_BUDGET_BYTES = 8 * 1024 * 1024     # per-buffer f32 x-tile budget
_VMEM_LIMIT_BYTES = 32 * 1024 * 1024       # scoped VMEM, safe on v5e/v6e/v7x


def _round_up(x, m):
    return ((x + m - 1) // m) * m


def _linear_kernel(w_ref, x_ref, b_ref, o_ref):
    # w_ref: (N, K) bf16 (resident)   x_ref: (tb, K) f32 (streamed)
    # b_ref: (1, N) f32               o_ref: (tb, N) f32
    x_bf16 = x_ref[...].astype(jnp.bfloat16)          # VPU cast, hides under DMA
    acc = jax.lax.dot_general(
        x_bf16, w_ref[...],
        dimension_numbers=(((1,), (1,)), ((), ())),   # contract on K for both
        preferred_element_type=jnp.float32,
    )                                                  # (tb, N) f32
    o_ref[...] = (acc + b_ref[...]).astype(o_ref.dtype)


def _pick_batch_tile(n_rows, in_features, block_b):
    """Batch tile: whole batch if small; otherwise aim for >=2 grid steps
    (v7x megacore), 128-aligned, capped by block_b and the VMEM budget."""
    if n_rows <= 128:
        return n_rows                              # single block == full batch
    tb = _round_up(pl.cdiv(n_rows, 2), 128)        # >=2 grid steps when possible
    tb = max(128, min(tb, block_b))
    row_bytes = in_features * 4                    # f32 feed
    max_tb = max(128, (_X_TILE_BUDGET_BYTES // row_bytes) // 128 * 128)
    return min(tb, max_tb)


def prepare_params(weight, bias):
    """One-time parameter prep (hoisted out of the per-batch forward path):
    weight (N, K) f32 -> bf16 in native PyTorch layout (no transpose),
    bias (N,) -> (1, N) f32."""
    w_bf16 = weight.astype(jnp.bfloat16)
    b2d = bias.reshape(1, -1).astype(jnp.float32)
    return w_bf16, b2d


def cifar10_forward(xb, w_bf16, b2d, *, block_b=2048):
    """Pallas equivalent of CIFAR10.forward: logits = flatten(xb) @ W.T + b.

    xb:     (B, C, H, W) float32 (NCHW)
    w_bf16: (numClasses, in_features) bfloat16  (from prepare_params)
    b2d:    (1, numClasses) float32             (from prepare_params)
    returns (B, numClasses) float32 logits
    """
    num_classes, in_features = w_bf16.shape

    # Flatten exactly like xb.reshape(-1, in_features) (row-major, NCHW).
    x2d = xb.reshape(-1, in_features)
    n_rows = x2d.shape[0]

    tb = _pick_batch_tile(n_rows, in_features, block_b)
    grid = (pl.cdiv(n_rows, tb),)

    cost = pl.CostEstimate(
        flops=2 * n_rows * in_features * num_classes,
        transcendentals=0,
        bytes_accessed=(n_rows * in_features * 4          # x   (f32)
                        + num_classes * in_features * 2   # W   (bf16)
                        + n_rows * num_classes * 4        # out (f32)
                        + num_classes * 4),               # bias
    )

    return pl.pallas_call(
        _linear_kernel,
        out_shape=jax.ShapeDtypeStruct((n_rows, num_classes), jnp.float32),
        grid=grid,
        in_specs=[
            # Weight & bias: same block every grid step -> stay VMEM-resident.
            pl.BlockSpec((num_classes, in_features), lambda i: (0, 0)),
            # x: one batch tile per grid step, streamed / double-buffered.
            pl.BlockSpec((tb, in_features), lambda i: (i, 0)),
            pl.BlockSpec((1, num_classes), lambda i: (0, 0)),
        ],
        out_specs=pl.BlockSpec((tb, num_classes), lambda i: (i, 0)),
        compiler_params=pltpu.CompilerParams(
            dimension_semantics=("parallel",),     # batch tiles are independent
            vmem_limit_bytes=_VMEM_LIMIT_BYTES,
        ),
        cost_estimate=cost,
    )(w_bf16, x2d, b2d)


def init_linear_params(key, in_features, num_classes):
    # Deterministic init mirroring nn.Linear default: U(-1/sqrt(K), 1/sqrt(K))
    kw, kb = jax.random.split(key)
    bound = 1.0 / jnp.sqrt(jnp.float32(in_features))
    weight = jax.random.uniform(
        kw, (num_classes, in_features), jnp.float32, -bound, bound)
    bias = jax.random.uniform(
        kb, (num_classes,), jnp.float32, -bound, bound)
    return weight, bias


if __name__ == "__main__":
    # Small shapes consistent with the module: inputSize = C*H*W = 4*16*16
    B, C, H, W = 2, 4, 16, 16
    num_classes = 10
    in_features = C * H * W

    key = jax.random.PRNGKey(0)
    kx, kp = jax.random.split(key)

    xb = jax.random.normal(kx, (B, C, H, W), dtype=jnp.float32)
    weight, bias = init_linear_params(kp, in_features, num_classes)

    w_bf16, b2d = prepare_params(weight, bias)          # once per model
    logits = cifar10_forward(xb, w_bf16, b2d)
    logits = jax.block_until_ready(logits)

    # Reference matching the kernel's MXU feed (bf16 x & W, f32 accumulation).
    x2d = xb.reshape(-1, in_features)
    ref = (x2d.astype(jnp.bfloat16).astype(jnp.float32)
           @ weight.astype(jnp.bfloat16).astype(jnp.float32).T) + bias

    assert logits.shape == (B, num_classes)
    assert jnp.allclose(logits, ref, atol=2e-3, rtol=2e-3)

    print("KERNEL_OK")
</pallas_src>

<mosaic_0001>
module attributes {stable_mosaic.version = 11 : i64} {
  func.func @_linear_kernel(%arg0: i32, %arg1: memref<10x1024xbf16, #tpu.memory_space<vmem>>, %arg2: memref<2x1024xf32, #tpu.memory_space<vmem>>, %arg3: memref<1x10xf32, #tpu.memory_space<vmem>>, %arg4: memref<2x10xf32, #tpu.memory_space<vmem>>) attributes {dimension_semantics = [#tpu.dimension_semantics<parallel>], iteration_bounds = array<i64: 1>, scalar_prefetch = 0 : i64, scratch_operands = 0 : i64, tpu.core_type = #tpu.core_type<tc>, window_params = [{pipeline_mode = #tpu.pipeline_mode<synchronous>, transform_indices = @transform_0, window_bounds = array<i64: 10, 1024>}, {transform_indices = @transform_1, window_bounds = array<i64: 2, 1024>}, {pipeline_mode = #tpu.pipeline_mode<synchronous>, transform_indices = @transform_2, window_bounds = array<i64: 1, 10>}, {transform_indices = @transform_3, window_bounds = array<i64: 2, 10>}]} {
    %c0 = arith.constant 0 : index
    %c0_0 = arith.constant 0 : index
    %0 = vector.load %arg2[%c0, %c0_0] : memref<2x1024xf32, #tpu.memory_space<vmem>>, vector<2x1024xf32>
    %1 = arith.truncf %0 : vector<2x1024xf32> to vector<2x1024xbf16>
    %c0_1 = arith.constant 0 : index
    %c0_2 = arith.constant 0 : index
    %2 = vector.load %arg1[%c0_1, %c0_2] : memref<10x1024xbf16, #tpu.memory_space<vmem>>, vector<10x1024xbf16>
    %cst = arith.constant dense<0.000000e+00> : vector<2x10xf32>
    %3 = tpu.matmul %1, %2, %cst {dimension_numbers = #tpu.dot_dimension_numbers<[1], [1], [0], [0], [0, 0, 1, 0], [], []>} : vector<2x1024xbf16>, vector<10x1024xbf16>, vector<2x10xf32> -> vector<2x10xf32>
    %c0_3 = arith.constant 0 : index
    %c0_4 = arith.constant 0 : index
    %4 = vector.load %arg3[%c0_3, %c0_4] : memref<1x10xf32, #tpu.memory_space<vmem>>, vector<1x10xf32>
    %5 = vector.broadcast %4 : vector<1x10xf32> to vector<2x10xf32>
    %6 = arith.addf %3, %5 : vector<2x10xf32>
    %c0_5 = arith.constant 0 : index
    %c0_6 = arith.constant 0 : index
    %7 = vector.load %arg4[%c0_5, %c0_6] : memref<2x10xf32, #tpu.memory_space<vmem>>, vector<2x10xf32>
    tpu.vector_store %arg4[%c0_5, %c0_6], %6 {strides = array<i32>} : memref<2x10xf32, #tpu.memory_space<vmem>>, vector<2x10xf32>,
    return
  }
  func.func @transform_0(%arg0: i32) -> (i32, i32) {
    %c0_i32 = arith.constant 0 : i32
    %c0_i32_0 = arith.constant 0 : i32
    %c0_i32_1 = arith.constant 0 : i32
    return %c0_i32, %c0_i32_0 : i32, i32
  }
  func.func @transform_1(%arg0: i32) -> (i32, i32) {
    %c0_i32 = arith.constant 0 : i32
    %c0_i32_0 = arith.constant 0 : i32
    return %arg0, %c0_i32 : i32, i32
  }
  func.func @transform_2(%arg0: i32) -> (i32, i32) {
    %c0_i32 = arith.constant 0 : i32
    %c0_i32_0 = arith.constant 0 : i32
    %c0_i32_1 = arith.constant 0 : i32
    return %c0_i32, %c0_i32_0 : i32, i32
  }
  func.func @transform_3(%arg0: i32) -> (i32, i32) {
    %c0_i32 = arith.constant 0 : i32
    %c0_i32_0 = arith.constant 0 : i32
    return %arg0, %c0_i32 : i32, i32
  }
}

</mosaic_0001>

<bundles_post_ra>
// kernel: tpu_custom_call.1
= control target key start
LH: loop header
LB: loop body
LE: loop exit
PB: predicated region body
PF: predicated region fallthrough
CT: control target
= control target key end

     0   :  { %8 = vsyncpa [#allocation3], 0  ;;  %s493_s0 = inlined_call_operand.hbm [shape: bf16[10,1024], index: 0, kind: input, shape index: {}]   ;;  %s494_s1 = inlined_call_operand.hbm [shape: f32[2,1024], index: 1, kind: input, shape index: {}]   ;;  %s495_s2 = inlined_call_operand.vmem [shape: f32[1,10], index: 2, kind: input, shape index: {}]   ;;  %s496_s3 = inlined_call_operand.hbm [shape: f32[2,10], index: 3, kind: output, shape index: {}]  }
   0x1   :  { %9 = vsyncpa [#allocation6], 0 }
   0x2   :  { %10 = vsyncpa [#allocation4], 0  ;;  %s428_s12 = smov [#allocation2]   ;;  %s356_s16 = scalar_lea.hbm %s493_s0, 1024 }
   0x3   :  { %s16_s13 = sshll.u32 %s428_s12, 4  ;;  %p357_p0 = scmp.ne.s32.totalorder %s493_s0, %s356_s16  ;;  %s17_s13 = int_to_ptr.vmem [resolvable:$true] %s16_s13 }
   0x4   :  { %p360_p1 = scmp.lt.u32.totalorder %s356_s16, %s493_s0 }
   0x6   :  { %p362_p2 = pnand %p360_p1, %p357_p0 }
   0x8   :  { %365 = shalt.err (!%p362_p2)
}
   0x9   :  { %s366_s21 = scalar_lea.vmem %s17_s13, 1024  ;;  %p371_p4 = scmp.lt.s32.totalorder %s17_s13, %s17_s13 }
   0xa   :  { %p367_p3 = scmp.ne.s32.totalorder %s17_s13, %s366_s21  ;;  %p372_p5 = scmp.lt.s32.totalorder %s366_s21, %s366_s21 }
   0xc   :  { %p373_p6 = por %p372_p5, %p371_p4 }
   0xe   :  { %p374_p7 = pnand %p373_p6, %p367_p3 }
  0x10   :  { %377 = shalt.err (!%p374_p7)
}
  0x11   :  { %s429_s22 = smov 512   ;;  %s430_s23 = smov 32  }
  0x12   :  { %22 = dma.hbm_to_vmem [thread:$0]  %s493_s0, 1024, %s17_s13, [#allocation3], %s429_s22, %s429_s22, %s430_s23  }
  0x13   :  { %s431_s26 = smov [#allocation5]   ;;  %s378_s30 = scalar_lea.hbm %s494_s1, 256 }
  0x14   :  { %s29_s27 = sshll.u32 %s431_s26, 4  ;;  %p379_p8 = scmp.ne.s32.totalorder %s494_s1, %s378_s30  ;;  %s30_s27 = int_to_ptr.vmem [resolvable:$true] %s29_s27 }
  0x15   :  { %p382_p9 = scmp.lt.u32.totalorder %s378_s30, %s494_s1 }
  0x17   :  { %p384_p10 = pnand %p382_p9, %p379_p8 }
  0x19   :  { %387 = shalt.err (!%p384_p10)
}
  0x1a   :  { %s388_s8 = scalar_lea.vmem %s30_s27, 256  ;;  %p393_p12 = scmp.lt.s32.totalorder %s30_s27, %s30_s27 }
  0x1b   :  { %p389_p11 = scmp.ne.s32.totalorder %s30_s27, %s388_s8  ;;  %p394_p13 = scmp.lt.s32.totalorder %s388_s8, %s388_s8 }
  0x1d   :  { %p395_p0 = por %p394_p13, %p393_p12 }
  0x1f   :  { %p396_p1 = pnand %p395_p0, %p389_p11 }
  0x21   :  { %399 = shalt.err (!%p396_p1)
}
  0x22   :  { %32 = dma.hbm_to_vmem [thread:$0]  %s494_s1, 256, %s30_s27, [#allocation6]  }
  0x23   :  { %422 = dma.done.wait [#allocation3], 1024  }
  0x24   :  { %423 = vsyncadd [#allocation3], 4294966272 }
  0x25   :  { %424 = dma.done.wait [#allocation6], 256  }
  0x26   :  { %425 = vsyncadd [#allocation6], 4294967040  ;;  %v50_v0 = vlaneseq  ;;  %v432_v1 = vmov 1983009808   ;;  %v96_v6 = vld [vmem:[#allocation2] sm:$0xff]  ;;  %v98_v8 = vld [vmem:[#allocation2 + $0x10] sm:$0xff] }
  0x27   :  { %v48_v2 = vunpack.c.l.s4 %v432_v1  ;;  %v100_v7 = vld [vmem:[#allocation2 + $0x20] sm:$0x11]  ;;  %v102_v10 = vld [vmem:[#allocation2 + $0x30] sm:$0x11]  ;;  %v43_v13 = vld [vmem:[#allocation5 + $0x8] sm:$0xff]  ;;  %s433_s11 = smov [#allocation7]  }
  0x28   :  { %v51_v3 = vshrl.u32 %v50_v0, 7  ;;  %v331_v9 = vcombine.high %v96_v6, %v100_v7  ;;  %v330_v11 = vcombine.low %v96_v6, %v100_v7  ;;  %v42_v12 = vld [vmem:[#allocation5] sm:$0xff]  ;;  %v335_v14 = vcombine.high %v98_v8, %v102_v10  ;;  %v97_v18 = vld [vmem:[#allocation2 + $0x8] sm:$0xff]  ;;  %v99_v20 = vld [vmem:[#allocation2 + $0x18] sm:$0xff]  ;;  %s319_s12 = sshll.u32 %s433_s11, 4  ;;  %s320_s12 = int_to_ptr.vmem [resolvable:$true] %s319_s12 }
  0x29   :  { %v49_v4 = vunpack.c.0.s8 %v48_v2  ;;  %v334_v15 = vcombine.low %v98_v8, %v102_v10  ;;  %v46_v16 = vcombine.high %v42_v12, %v42_v12  ;;  %v101_v19 = vld [vmem:[#allocation2 + $0x28] sm:$0x11]  ;;  %v63_v21 = vcombine.high %v43_v13, %v43_v13  ;;  %v103_v24 = vld [vmem:[#allocation2 + $0x38] sm:$0x11]  ;;  %v329_v42 = vld [vmem:[%s495_s2] ss:$0 sm:$0xff]  ;;  %p405_p3 = scmp.lt.s32.totalorder %s320_s12, %s320_s12 }
  0x2a   :  { %151 = vmatprep.subr.bf16.mxu1 %v331_v9  ;;  %v333_v23 = vcombine.high %v97_v18, %v101_v19  ;;  %231 = vmatprep.subr.bf16.mxu0 %v335_v14  ;;  %v337_v27 = vcombine.high %v99_v20, %v103_v24  ;;  %v332_v33 = vcombine.low %v97_v18, %v101_v19  ;;  %vm311_vm0 = vcmask 74752   ;;  %s400_s13 = scalar_lea.vmem %s320_s12, 32 }
  0x2b   :  { %v52_v5 = vsub.s32 %v49_v4, %v51_v3  ;;  %152 = vmatpush1.bf16.xpose.msra.mxu1 %v330_v11  ;;  %232 = vmatpush1.bf16.xpose.msra.mxu0 %v334_v15  ;;  %v336_v37 = vcombine.low %v99_v20, %v103_v24  ;;  %p401_p2 = scmp.ne.s32.totalorder %s320_s12, %s400_s13  ;;  %p406_p4 = scmp.lt.s32.totalorder %s400_s13, %s400_s13 }
  0x2c   :  { %191 = vmatprep.subr.bf16.mxu1 %v333_v23  ;;  %271 = vmatprep.subr.bf16.mxu0 %v337_v27 }
  0x2d   :  { %v53_v17 = vrot.slane %v42_v12, %v52_v5  ;;  %v70_v22 = vrot.slane %v43_v13, %v52_v5  ;;  %v60_v29 = vrot.slane %v46_v16, %v52_v5  ;;  %v77_v30 = vrot.slane %v63_v21, %v52_v5  ;;  %p407_p5 = por %p406_p4, %p405_p3 }
  0x2f   :  { %v61_v25 = vcombine.high %v53_v17, %v53_v17  ;;  %v78_v26 = vcombine.high %v70_v22, %v70_v22  ;;  %v88_v32 = vpack.c.bf16 %v53_v17, %v53_v17  ;;  %v92_v34 = vpack.c.bf16 %v70_v22, %v70_v22  ;;  %p408_p6 = pnand %p407_p5, %p401_p2 }
  0x30   :  { %v62_v35 = vcombine.high %v60_v29, %v60_v29  ;;  %v79_v36 = vcombine.high %v77_v30, %v77_v30  ;;  %v90_v40 = vpack.c.bf16 %v60_v29, %v60_v29  ;;  %v94_v41 = vpack.c.bf16 %v77_v30, %v77_v30 }
  0x31   :  { %v89_v28 = vpack.c.bf16 %v61_v25, %v61_v25  ;;  %v93_v31 = vpack.c.bf16 %v78_v26, %v78_v26 }
  0x32   :  { %v91_v38 = vpack.c.bf16 %v62_v35, %v62_v35  ;;  %v95_v39 = vpack.c.bf16 %v79_v36, %v79_v36 }
  0x33   :  { %183 = vmatprep.mubr.bf16.mxu1 %v89_v28  ;;  %263 = vmatprep.mubr.bf16.mxu0 %v93_v31 }
  0x34   :  { %184 = vmatmul.mubr.bf16.vlgmr.msra.gmra.mrb[0].mxu1 %v88_v32  ;;  %264 = vmatmul.mubr.bf16.vlgmr.msra.gmra.mrb[0].mxu0 %v92_v34 }
  0x35   :  { %192 = vmatpush1.bf16.xpose.msra.mxu1 %v332_v33  ;;  %272 = vmatpush1.bf16.xpose.msra.mxu0 %v336_v37 }
  0x36   :  { %223 = vmatprep.mubr.bf16.mxu1 %v91_v38  ;;  %303 = vmatprep.mubr.bf16.mxu0 %v95_v39 }
  0x40   :  { %224 = vmatmul.mubr.bf16.vlgmr.msra.gmra.mrb[0].mxu1 %v90_v40  ;;  %304 = vmatmul.mubr.bf16.vlgmr.msra.gmra.mrb[0].mxu0 %v94_v41 }
 0x113   :  { %v225_v43 = vpop.f32.mrb[0].mxu1  ;;  %v305_v45 = vpop.f32.mrb[0].mxu0 }
 0x114   :  { %v338_v44 = vadd.f32 %v329_v42, %v225_v43  ;;  %v227_v46 = vpop.f32.mrb[1].mxu1  ;;  %v307_v47 = vpop.f32.mrb[1].mxu0 }
 0x115   :  { %v228_v48 = vpop.f32.mrb[2].mxu1  ;;  %v308_v50 = vpop.f32.mrb[2].mxu0 }
 0x116   :  { %v339_v49 = vadd.f32 %v338_v44, %v305_v45  ;;  %v229_v51 = vpop.f32.mrb[3].mxu1  ;;  %v309_v52 = vpop.f32.mrb[3].mxu0 }
 0x118   :  { %312 = vst.msk [vmem:[#allocation7] sm:$0x3] %vm311_vm0, %v339_v49 }
 0x119   :  { %411 = shalt.err (!%p408_p6)
}
 0x11a   :  { %s412_s15 = scalar_lea.hbm %s496_s3, 32 }
 0x11b   :  { %p413_p7 = scmp.ne.s32.totalorder %s496_s3, %s412_s15  ;;  %p416_p8 = scmp.lt.u32.totalorder %s412_s15, %s496_s3 }
 0x11d   :  { %p418_p9 = pnand %p416_p8, %p413_p7 }
 0x11f   :  { %421 = shalt.err (!%p418_p9)
}
 0x120   :  { %322 = dma.vmem_to_hbm [thread:$0]  %s320_s12, 32, %s496_s3, [#allocation4]  }
 0x121   :  { %426 = dma.done.wait [#allocation4], 32  }
 0x122   :  { %427 = vsyncadd [#allocation4], 4294967264 }
 0x123   :  { %326 = vsyncpa [#allocation3], 1 }
 0x124   :  { %327 = vsyncpa [#allocation6], 1 }
 0x125   :  { %328 = vsyncpa [#allocation4], 1 }

</bundles_post_ra>
